<compile_context>
chip_gen: v7x
topology: tpu7x:2x2x1
jax: 0.10.0
libtpu: 0.0.40
codegen_flags: <defaults>
</compile_context>

<pallas_src>
import functools

import jax
import jax.numpy as jnp
from jax.experimental import pallas as pl
from jax.experimental.pallas import tpu as pltpu


_LN_EPS = 1e-5  # PyTorch nn.LayerNorm default


def _gelu_tanh(x):
    # GELU('tanh') approximation, matches torch.nn.GELU('tanh').
    c = 0.7978845608028654  # sqrt(2/pi)
    return 0.5 * x * (1.0 + jnp.tanh(c * (x + 0.044715 * x * x * x)))


def _layernorm(x, gamma, beta):
    mean = jnp.mean(x, axis=-1, keepdims=True)
    var = jnp.mean((x - mean) ** 2, axis=-1, keepdims=True)
    xn = (x - mean) * jax.lax.rsqrt(var + _LN_EPS)
    return xn * gamma + beta


def mixer_kernel(x_ref, vec_ref, tb1_ref, tb2_ref,
                 tw1t_ref, tw2t_ref, cw1_ref, cw2_ref, o_ref,
                 *, block_b, patches, matmul_dtype):
    bb, P = block_b, patches
    C = x_ref.shape[-1]
    T = tw1t_ref.shape[0]
    D = cw1_ref.shape[-1]

    def mm(a, b):
        # MXU matmul; operands in matmul_dtype (bf16 by default), f32 accumulate.
        return jnp.dot(a.astype(matmul_dtype), b.astype(matmul_dtype),
                       preferred_element_type=jnp.float32)

    x = x_ref[...].astype(jnp.float32)            # (bb*P, C) row tile

    # Packed lane-dense (row-broadcast) small vectors; padded lanes never read.
    vec = vec_ref[...]                            # (6, W) f32
    ln1_g, ln1_b = vec[0:1, :C], vec[1:2, :C]
    ln2_g, ln2_b = vec[2:3, :C], vec[3:4, :C]
    cb1,   cb2   = vec[4:5, :D], vec[5:6, :C]
    # Token-mix biases as columns (broadcast over the lane/C axis).
    tb1c = tb1_ref[...]                           # (T, 1) f32
    tb2c = tb2_ref[...]                           # (P, 1) f32

    tw1t = tw1t_ref[...]                          # (T, P)  resident, matmul_dtype
    tw2t = tw2t_ref[...]                          # (P, T)

    # ---- token-mixing branch: x + MLP over patches (contraction over P) ----
    # No activation transpose: weights were pre-transposed in the wrapper, so
    # h = tw1^T @ xn keeps C on lanes throughout.
    xn = _layernorm(x, ln1_g, ln1_b)              # (bb*P, C)
    tok = []
    for b in range(bb):                           # small static unroll (<= block_b)
        xn_b = xn[b * P:(b + 1) * P, :]           # (P, C)
        h_b = _gelu_tanh(mm(tw1t, xn_b) + tb1c)   # (T, C)
        tok.append(mm(tw2t, h_b) + tb2c)          # (P, C)
    t = tok[0] if bb == 1 else jnp.concatenate(tok, axis=0)   # (bb*P, C)
    x1 = x + t                                    # residual

    # ---- channel-mixing branch: x1 + MLP over channels (folded row tile) ----
    yn = _layernorm(x1, ln2_g, ln2_b)             # (bb*P, C)
    h2 = _gelu_tanh(mm(yn, cw1_ref[...]) + cb1)   # (bb*P, D)
    c_out = mm(h2, cw2_ref[...]) + cb2            # (bb*P, C)

    o_ref[...] = (x1 + c_out).astype(o_ref.dtype)


def _pick_block_b(B, P, target_rows):
    """Images per grid step: divides B, gives sublane-aligned row tiles."""
    cands = [d for d in range(1, B + 1)
             if B % d == 0 and ((d * P) % 8 == 0 or d == B)]
    fitting = [d for d in cands if d * P <= max(target_rows, P)]
    return max(fitting) if fitting else min(cands)


def mixer_layer(x, params, *, matmul_dtype=jnp.bfloat16, block_rows_target=256):
    """x: (B, P, C) float32; params: dict of weights (see init_params)."""
    B, P, C = x.shape
    T = params["tw1"].shape[1]   # token_dim
    D = params["cw1"].shape[1]   # channel_dim

    # Row tile: aim for MXU-aligned M (>=256 on v6e/v7x, >=128 on v5e).
    bb = _pick_block_b(B, P, block_rows_target)
    rows = bb * P
    grid = (B // bb,)

    # Packed lane-dense (1, dim) vectors -> one (6, W) f32 slab.
    W = max(128, ((max(C, D) + 127) // 128) * 128)

    def row(name, n):
        return jnp.pad(params[name].reshape(-1).astype(jnp.float32), (0, W - n))

    vec = jnp.stack([
        row("ln1_g", C), row("ln1_b", C),
        row("ln2_g", C), row("ln2_b", C),
        row("cb1", D),   row("cb2", C),
    ])  # (6, W)

    # Token-mix biases as columns (per-row constants, broadcast over lanes).
    tb1c = params["tb1"].reshape(T, 1).astype(jnp.float32)
    tb2c = params["tb2"].reshape(P, 1).astype(jnp.float32)

    # Weights: convert ONCE here (bf16 by default) and pre-transpose the tiny
    # token-mix matrices so the kernel needs no activation transposes.
    tw1t = params["tw1"].T.astype(matmul_dtype)   # (T, P)
    tw2t = params["tw2"].T.astype(matmul_dtype)   # (P, T)
    cw1 = params["cw1"].astype(matmul_dtype)      # (C, D)
    cw2 = params["cw2"].astype(matmul_dtype)      # (D, C)

    x2d = x.reshape(B * P, C)

    kernel = functools.partial(mixer_kernel, block_b=bb, patches=P,
                               matmul_dtype=matmul_dtype)

    def const_spec(arr):
        nd = arr.ndim
        return pl.BlockSpec(arr.shape, lambda i, _nd=nd: (0,) * _nd)  # resident

    in_specs = [
        pl.BlockSpec((rows, C), lambda i: (i, 0)),   # x: streams per grid step
        const_spec(vec),
        const_spec(tb1c), const_spec(tb2c),
        const_spec(tw1t), const_spec(tw2t),
        const_spec(cw1),  const_spec(cw2),
    ]
    out_spec = pl.BlockSpec((rows, C), lambda i: (i, 0))

    # Explicit scoped-VMEM budget (review item): resident consts (x2 for
    # possible double-buffering) + double-buffered in/out tiles + the largest
    # intermediates (h2 dominates), with 2x margin; clamped v7x-safe (<48 MiB).
    def nbytes(a):
        return a.size * a.dtype.itemsize
    est = 2 * sum(nbytes(a) for a in (vec, tb1c, tb2c, tw1t, tw2t, cw1, cw2))
    est += 4 * rows * C * 4                                   # 2x dbl-buffered in/out f32
    est += (rows * D + 4 * rows * C + bb * max(T, P) * C) * 4  # h2 + temps f32
    vmem_limit = int(min(48 << 20, max(8 << 20, 2 * est)))

    out2d = pl.pallas_call(
        kernel,
        out_shape=jax.ShapeDtypeStruct((B * P, C), x.dtype),
        grid=grid,
        in_specs=in_specs,
        out_specs=out_spec,
        compiler_params=pltpu.CompilerParams(
            dimension_semantics=("parallel",),       # megacore-shard the batch axis
            vmem_limit_bytes=vmem_limit),
    )(x2d, vec, tb1c, tb2c, tw1t, tw2t, cw1, cw2)

    return out2d.reshape(B, P, C)


def init_params(key, embed_dim, num_patches, token_dim, channel_dim):
    ks = jax.random.split(key, 8)
    scale = 0.02
    return {
        # LayerNorm 1 (token-mixing pre-norm)
        "ln1_g": jnp.ones((1, embed_dim), jnp.float32),
        "ln1_b": jnp.zeros((1, embed_dim), jnp.float32),
        # token-mixing MLP: Linear(P -> token_dim), Linear(token_dim -> P)
        # (stored already transposed so reference does y = x @ W + b)
        "tw1": scale * jax.random.normal(ks[0], (num_patches, token_dim), jnp.float32),
        "tb1": scale * jax.random.normal(ks[1], (1, token_dim), jnp.float32),
        "tw2": scale * jax.random.normal(ks[2], (token_dim, num_patches), jnp.float32),
        "tb2": scale * jax.random.normal(ks[3], (1, num_patches), jnp.float32),
        # LayerNorm 2 (channel-mixing pre-norm)
        "ln2_g": jnp.ones((1, embed_dim), jnp.float32),
        "ln2_b": jnp.zeros((1, embed_dim), jnp.float32),
        # channel-mixing MLP: Linear(C -> channel_dim), Linear(channel_dim -> C)
        "cw1": scale * jax.random.normal(ks[4], (embed_dim, channel_dim), jnp.float32),
        "cb1": scale * jax.random.normal(ks[5], (1, channel_dim), jnp.float32),
        "cw2": scale * jax.random.normal(ks[6], (channel_dim, embed_dim), jnp.float32),
        "cb2": scale * jax.random.normal(ks[7], (1, embed_dim), jnp.float32),
    }


def mixer_layer_ref(x, p):
    """Pure-JAX reference mirroring the PyTorch forward (dropout is identity)."""
    def ln(v, g, b):
        m = jnp.mean(v, -1, keepdims=True)
        s = jnp.mean((v - m) ** 2, -1, keepdims=True)
        return (v - m) * jax.lax.rsqrt(s + _LN_EPS) * g + b

    t = jnp.swapaxes(ln(x, p["ln1_g"], p["ln1_b"]), 1, 2)             # (B, C, P)
    t = _gelu_tanh(t @ p["tw1"] + p["tb1"]) @ p["tw2"] + p["tb2"]     # (B, C, P)
    x1 = x + jnp.swapaxes(t, 1, 2)
    y = ln(x1, p["ln2_g"], p["ln2_b"])
    y = _gelu_tanh(y @ p["cw1"] + p["cb1"]) @ p["cw2"] + p["cb2"]
    return x1 + y


if __name__ == "__main__":
    # MixerLayer(embed_dim=32, num_patches=8, token_dim=16, channel_dim=64, dropout_p=0.0)
    B, P, C = 2, 8, 32
    token_dim, channel_dim = 16, 64

    key = jax.random.PRNGKey(0)
    k_x, k_p = jax.random.split(key)
    x = jax.random.normal(k_x, (B, P, C), jnp.float32)
    params = init_params(k_p, C, P, token_dim, channel_dim)
    ref = mixer_layer_ref(x, params)

    # f32 MXU path, small row tile -> grid=(2,): exercises streaming-x /
    # resident-weight pipelining; tight tolerance.
    out_f32 = jax.block_until_ready(
        mixer_layer(x, params, matmul_dtype=jnp.float32, block_rows_target=8))
    assert out_f32.shape == (B, P, C)
    err_f32 = float(jnp.max(jnp.abs(out_f32 - ref)))
    assert jnp.allclose(out_f32, ref, atol=1e-5, rtol=1e-5), f"f32 max err {err_f32}"

    # bf16 MXU path (production default: bf16-native on v5e/v6e/v7x) —
    # looser tolerance for expected bf16 operand rounding.
    out_bf16 = jax.block_until_ready(mixer_layer(x, params))
    err_bf16 = float(jnp.max(jnp.abs(out_bf16 - ref)))
    assert jnp.allclose(out_bf16, ref, atol=2e-2, rtol=2e-2), f"bf16 max err {err_bf16}"

    print("KERNEL_OK")
</pallas_src>

<mosaic_0001>
module attributes {stable_mosaic.version = 11 : i64} {
  func.func @mixer_kernel(%arg0: i32, %arg1: memref<8x32xf32, #tpu.memory_space<vmem>>, %arg2: memref<6x128xf32, #tpu.memory_space<vmem>>, %arg3: memref<16x1xf32, #tpu.memory_space<vmem>>, %arg4: memref<8x1xf32, #tpu.memory_space<vmem>>, %arg5: memref<16x8xf32, #tpu.memory_space<vmem>>, %arg6: memref<8x16xf32, #tpu.memory_space<vmem>>, %arg7: memref<32x64xf32, #tpu.memory_space<vmem>>, %arg8: memref<64x32xf32, #tpu.memory_space<vmem>>, %arg9: memref<8x32xf32, #tpu.memory_space<vmem>>) attributes {dimension_semantics = [#tpu.dimension_semantics<parallel>], iteration_bounds = array<i64: 2>, scalar_prefetch = 0 : i64, scratch_operands = 0 : i64, tpu.core_type = #tpu.core_type<tc>, window_params = [{transform_indices = @transform_0, window_bounds = array<i64: 8, 32>}, {pipeline_mode = #tpu.pipeline_mode<synchronous>, transform_indices = @transform_1, window_bounds = array<i64: 6, 128>}, {pipeline_mode = #tpu.pipeline_mode<synchronous>, transform_indices = @transform_2, window_bounds = array<i64: 16, 1>}, {pipeline_mode = #tpu.pipeline_mode<synchronous>, transform_indices = @transform_3, window_bounds = array<i64: 8, 1>}, {pipeline_mode = #tpu.pipeline_mode<synchronous>, transform_indices = @transform_4, window_bounds = array<i64: 16, 8>}, {pipeline_mode = #tpu.pipeline_mode<synchronous>, transform_indices = @transform_5, window_bounds = array<i64: 8, 16>}, {pipeline_mode = #tpu.pipeline_mode<synchronous>, transform_indices = @transform_6, window_bounds = array<i64: 32, 64>}, {pipeline_mode = #tpu.pipeline_mode<synchronous>, transform_indices = @transform_7, window_bounds = array<i64: 64, 32>}, {transform_indices = @transform_8, window_bounds = array<i64: 8, 32>}]} {
    %c0 = arith.constant 0 : index
    %c0_0 = arith.constant 0 : index
    %0 = vector.load %arg1[%c0, %c0_0] : memref<8x32xf32, #tpu.memory_space<vmem>>, vector<8x32xf32>
    %c0_1 = arith.constant 0 : index
    %c0_2 = arith.constant 0 : index
    %1 = vector.load %arg2[%c0_1, %c0_2] : memref<6x128xf32, #tpu.memory_space<vmem>>, vector<6x128xf32>
    %2 = vector.extract_strided_slice %1 {offsets = [0, 0], sizes = [1, 32], strides = [1, 1]} : vector<6x128xf32> to vector<1x32xf32>
    %3 = vector.extract_strided_slice %1 {offsets = [1, 0], sizes = [1, 32], strides = [1, 1]} : vector<6x128xf32> to vector<1x32xf32>
    %4 = vector.extract_strided_slice %1 {offsets = [2, 0], sizes = [1, 32], strides = [1, 1]} : vector<6x128xf32> to vector<1x32xf32>
    %5 = vector.extract_strided_slice %1 {offsets = [3, 0], sizes = [1, 32], strides = [1, 1]} : vector<6x128xf32> to vector<1x32xf32>
    %6 = vector.extract_strided_slice %1 {offsets = [4, 0], sizes = [1, 64], strides = [1, 1]} : vector<6x128xf32> to vector<1x64xf32>
    %7 = vector.extract_strided_slice %1 {offsets = [5, 0], sizes = [1, 32], strides = [1, 1]} : vector<6x128xf32> to vector<1x32xf32>
    %c0_3 = arith.constant 0 : index
    %c0_4 = arith.constant 0 : index
    %8 = vector.load %arg3[%c0_3, %c0_4] : memref<16x1xf32, #tpu.memory_space<vmem>>, vector<16x1xf32>
    %c0_5 = arith.constant 0 : index
    %c0_6 = arith.constant 0 : index
    %9 = vector.load %arg4[%c0_5, %c0_6] : memref<8x1xf32, #tpu.memory_space<vmem>>, vector<8x1xf32>
    %c0_7 = arith.constant 0 : index
    %c0_8 = arith.constant 0 : index
    %10 = vector.load %arg5[%c0_7, %c0_8] : memref<16x8xf32, #tpu.memory_space<vmem>>, vector<16x8xf32>
    %c0_9 = arith.constant 0 : index
    %c0_10 = arith.constant 0 : index
    %11 = vector.load %arg6[%c0_9, %c0_10] : memref<8x16xf32, #tpu.memory_space<vmem>>, vector<8x16xf32>
    %cst = arith.constant dense<0.000000e+00> : vector<8xf32>
    %12 = vector.multi_reduction <add>, %0, %cst [1] : vector<8x32xf32> to vector<8xf32>
    %13 = vector.shape_cast %12 : vector<8xf32> to vector<8x1xf32>
    %cst_11 = arith.constant 3.200000e+01 : f32
    %14 = vector.broadcast %cst_11 : f32 to vector<8x1xf32>
    %15 = arith.divf %13, %14 : vector<8x1xf32>
    %16 = vector.broadcast %15 : vector<8x1xf32> to vector<8x32xf32>
    %17 = arith.subf %0, %16 : vector<8x32xf32>
    %18 = arith.mulf %17, %17 : vector<8x32xf32>
    %cst_12 = arith.constant dense<0.000000e+00> : vector<8xf32>
    %19 = vector.multi_reduction <add>, %18, %cst_12 [1] : vector<8x32xf32> to vector<8xf32>
    %20 = vector.shape_cast %19 : vector<8xf32> to vector<8x1xf32>
    %cst_13 = arith.constant 3.200000e+01 : f32
    %21 = vector.broadcast %cst_13 : f32 to vector<8x1xf32>
    %22 = arith.divf %20, %21 : vector<8x1xf32>
    %23 = vector.broadcast %15 : vector<8x1xf32> to vector<8x32xf32>
    %24 = arith.subf %0, %23 : vector<8x32xf32>
    %cst_14 = arith.constant 9.99999974E-6 : f32
    %25 = vector.broadcast %cst_14 : f32 to vector<8x1xf32>
    %26 = arith.addf %22, %25 : vector<8x1xf32>
    %27 = math.rsqrt %26 : vector<8x1xf32>
    %28 = vector.broadcast %27 : vector<8x1xf32> to vector<8x32xf32>
    %29 = arith.mulf %24, %28 : vector<8x32xf32>
    %30 = vector.broadcast %2 : vector<1x32xf32> to vector<8x32xf32>
    %31 = arith.mulf %29, %30 : vector<8x32xf32>
    %32 = vector.broadcast %3 : vector<1x32xf32> to vector<8x32xf32>
    %33 = arith.addf %31, %32 : vector<8x32xf32>
    %cst_15 = arith.constant dense<0.000000e+00> : vector<16x32xf32>
    %34 = tpu.matmul %10, %33, %cst_15 {dimension_numbers = #tpu.dot_dimension_numbers<[1], [0], [0], [1], [0, 0, 1, 1], [], []>} : vector<16x8xf32>, vector<8x32xf32>, vector<16x32xf32> -> vector<16x32xf32>
    %35 = vector.broadcast %8 : vector<16x1xf32> to vector<16x32xf32>
    %36 = arith.addf %34, %35 : vector<16x32xf32>
    %cst_16 = arith.constant 5.000000e-01 : f32
    %37 = vector.broadcast %cst_16 : f32 to vector<16x32xf32>
    %38 = arith.mulf %37, %36 : vector<16x32xf32>
    %cst_17 = arith.constant 4.471500e-02 : f32
    %39 = vector.broadcast %cst_17 : f32 to vector<16x32xf32>
    %40 = arith.mulf %39, %36 : vector<16x32xf32>
    %41 = arith.mulf %40, %36 : vector<16x32xf32>
    %42 = arith.mulf %41, %36 : vector<16x32xf32>
    %43 = arith.addf %36, %42 : vector<16x32xf32>
    %cst_18 = arith.constant 0.797884583 : f32
    %44 = vector.broadcast %cst_18 : f32 to vector<16x32xf32>
    %45 = arith.mulf %44, %43 : vector<16x32xf32>
    %46 = math.tanh %45 : vector<16x32xf32>
    %cst_19 = arith.constant 1.000000e+00 : f32
    %47 = vector.broadcast %cst_19 : f32 to vector<16x32xf32>
    %48 = arith.addf %47, %46 : vector<16x32xf32>
    %49 = arith.mulf %38, %48 : vector<16x32xf32>
    %cst_20 = arith.constant dense<0.000000e+00> : vector<8x32xf32>
    %50 = tpu.matmul %11, %49, %cst_20 {dimension_numbers = #tpu.dot_dimension_numbers<[1], [0], [0], [1], [0, 0, 1, 1], [], []>} : vector<8x16xf32>, vector<16x32xf32>, vector<8x32xf32> -> vector<8x32xf32>
    %51 = vector.broadcast %9 : vector<8x1xf32> to vector<8x32xf32>
    %52 = arith.addf %50, %51 : vector<8x32xf32>
    %53 = arith.addf %0, %52 : vector<8x32xf32>
    %cst_21 = arith.constant dense<0.000000e+00> : vector<8xf32>
    %54 = vector.multi_reduction <add>, %53, %cst_21 [1] : vector<8x32xf32> to vector<8xf32>
    %55 = vector.shape_cast %54 : vector<8xf32> to vector<8x1xf32>
    %cst_22 = arith.constant 3.200000e+01 : f32
    %56 = vector.broadcast %cst_22 : f32 to vector<8x1xf32>
    %57 = arith.divf %55, %56 : vector<8x1xf32>
    %58 = vector.broadcast %57 : vector<8x1xf32> to vector<8x32xf32>
    %59 = arith.subf %53, %58 : vector<8x32xf32>
    %60 = arith.mulf %59, %59 : vector<8x32xf32>
    %cst_23 = arith.constant dense<0.000000e+00> : vector<8xf32>
    %61 = vector.multi_reduction <add>, %60, %cst_23 [1] : vector<8x32xf32> to vector<8xf32>
    %62 = vector.shape_cast %61 : vector<8xf32> to vector<8x1xf32>
    %cst_24 = arith.constant 3.200000e+01 : f32
    %63 = vector.broadcast %cst_24 : f32 to vector<8x1xf32>
    %64 = arith.divf %62, %63 : vector<8x1xf32>
    %65 = vector.broadcast %57 : vector<8x1xf32> to vector<8x32xf32>
    %66 = arith.subf %53, %65 : vector<8x32xf32>
    %cst_25 = arith.constant 9.99999974E-6 : f32
    %67 = vector.broadcast %cst_25 : f32 to vector<8x1xf32>
    %68 = arith.addf %64, %67 : vector<8x1xf32>
    %69 = math.rsqrt %68 : vector<8x1xf32>
    %70 = vector.broadcast %69 : vector<8x1xf32> to vector<8x32xf32>
    %71 = arith.mulf %66, %70 : vector<8x32xf32>
    %72 = vector.broadcast %4 : vector<1x32xf32> to vector<8x32xf32>
    %73 = arith.mulf %71, %72 : vector<8x32xf32>
    %74 = vector.broadcast %5 : vector<1x32xf32> to vector<8x32xf32>
    %75 = arith.addf %73, %74 : vector<8x32xf32>
    %c0_26 = arith.constant 0 : index
    %c0_27 = arith.constant 0 : index
    %76 = vector.load %arg7[%c0_26, %c0_27] : memref<32x64xf32, #tpu.memory_space<vmem>>, vector<32x64xf32>
    %cst_28 = arith.constant dense<0.000000e+00> : vector<8x64xf32>
    %77 = tpu.matmul %75, %76, %cst_28 {dimension_numbers = #tpu.dot_dimension_numbers<[1], [0], [0], [1], [0, 0, 1, 1], [], []>} : vector<8x32xf32>, vector<32x64xf32>, vector<8x64xf32> -> vector<8x64xf32>
    %78 = vector.broadcast %6 : vector<1x64xf32> to vector<8x64xf32>
    %79 = arith.addf %77, %78 : vector<8x64xf32>
    %cst_29 = arith.constant 5.000000e-01 : f32
    %80 = vector.broadcast %cst_29 : f32 to vector<8x64xf32>
    %81 = arith.mulf %80, %79 : vector<8x64xf32>
    %cst_30 = arith.constant 4.471500e-02 : f32
    %82 = vector.broadcast %cst_30 : f32 to vector<8x64xf32>
    %83 = arith.mulf %82, %79 : vector<8x64xf32>
    %84 = arith.mulf %83, %79 : vector<8x64xf32>
    %85 = arith.mulf %84, %79 : vector<8x64xf32>
    %86 = arith.addf %79, %85 : vector<8x64xf32>
    %cst_31 = arith.constant 0.797884583 : f32
    %87 = vector.broadcast %cst_31 : f32 to vector<8x64xf32>
    %88 = arith.mulf %87, %86 : vector<8x64xf32>
    %89 = math.tanh %88 : vector<8x64xf32>
    %cst_32 = arith.constant 1.000000e+00 : f32
    %90 = vector.broadcast %cst_32 : f32 to vector<8x64xf32>
    %91 = arith.addf %90, %89 : vector<8x64xf32>
    %92 = arith.mulf %81, %91 : vector<8x64xf32>
    %c0_33 = arith.constant 0 : index
    %c0_34 = arith.constant 0 : index
    %93 = vector.load %arg8[%c0_33, %c0_34] : memref<64x32xf32, #tpu.memory_space<vmem>>, vector<64x32xf32>
    %cst_35 = arith.constant dense<0.000000e+00> : vector<8x32xf32>
    %94 = tpu.matmul %92, %93, %cst_35 {dimension_numbers = #tpu.dot_dimension_numbers<[1], [0], [0], [1], [0, 0, 1, 1], [], []>} : vector<8x64xf32>, vector<64x32xf32>, vector<8x32xf32> -> vector<8x32xf32>
    %95 = vector.broadcast %7 : vector<1x32xf32> to vector<8x32xf32>
    %96 = arith.addf %94, %95 : vector<8x32xf32>
    %97 = arith.addf %53, %96 : vector<8x32xf32>
    %c0_36 = arith.constant 0 : index
    %c0_37 = arith.constant 0 : index
    %98 = vector.load %arg9[%c0_36, %c0_37] : memref<8x32xf32, #tpu.memory_space<vmem>>, vector<8x32xf32>
    tpu.vector_store %arg9[%c0_36, %c0_37], %97 {strides = array<i32>} : memref<8x32xf32, #tpu.memory_space<vmem>>, vector<8x32xf32>,
    return
  }
  func.func @transform_0(%arg0: i32) -> (i32, i32) {
    %c0_i32 = arith.constant 0 : i32
    %c0_i32_0 = arith.constant 0 : i32
    return %arg0, %c0_i32 : i32, i32
  }
  func.func @transform_1(%arg0: i32) -> (i32, i32) {
    %c0_i32 = arith.constant 0 : i32
    %c0_i32_0 = arith.constant 0 : i32
    %c0_i32_1 = arith.constant 0 : i32
    return %c0_i32, %c0_i32_0 : i32, i32
  }
  func.func @transform_2(%arg0: i32) -> (i32, i32) {
    %c0_i32 = arith.constant 0 : i32
    %c0_i32_0 = arith.constant 0 : i32
    %c0_i32_1 = arith.constant 0 : i32
    return %c0_i32, %c0_i32_0 : i32, i32
  }
  func.func @transform_3(%arg0: i32) -> (i32, i32) {
    %c0_i32 = arith.constant 0 : i32
    %c0_i32_0 = arith.constant 0 : i32
    %c0_i32_1 = arith.constant 0 : i32
    return %c0_i32, %c0_i32_0 : i32, i32
  }
  func.func @transform_4(%arg0: i32) -> (i32, i32) {
    %c0_i32 = arith.constant 0 : i32
    %c0_i32_0 = arith.constant 0 : i32
    %c0_i32_1 = arith.constant 0 : i32
    return %c0_i32, %c0_i32_0 : i32, i32
  }
  func.func @transform_5(%arg0: i32) -> (i32, i32) {
    %c0_i32 = arith.constant 0 : i32
    %c0_i32_0 = arith.constant 0 : i32
    %c0_i32_1 = arith.constant 0 : i32
    return %c0_i32, %c0_i32_0 : i32, i32
  }
  func.func @transform_6(%arg0: i32) -> (i32, i32) {
    %c0_i32 = arith.constant 0 : i32
    %c0_i32_0 = arith.constant 0 : i32
    %c0_i32_1 = arith.constant 0 : i32
    return %c0_i32, %c0_i32_0 : i32, i32
  }
  func.func @transform_7(%arg0: i32) -> (i32, i32) {
    %c0_i32 = arith.constant 0 : i32
    %c0_i32_0 = arith.constant 0 : i32
    %c0_i32_1 = arith.constant 0 : i32
    return %c0_i32, %c0_i32_0 : i32, i32
  }
  func.func @transform_8(%arg0: i32) -> (i32, i32) {
    %c0_i32 = arith.constant 0 : i32
    %c0_i32_0 = arith.constant 0 : i32
    return %arg0, %c0_i32 : i32, i32
  }
}

</mosaic_0001>

<bundles_post_ra>
// kernel: tpu_custom_call.1
= control target key start
LH: loop header
LB: loop body
LE: loop exit
PB: predicated region body
PF: predicated region fallthrough
CT: control target
= control target key end

     0   :  { %13 = vsyncpa [#allocation3], 0  ;;  %s1266_s0 = inlined_call_operand.vmem [shape: f32[16,32], index: 0, kind: input, shape index: {}]   ;;  %s1267_s1 = inlined_call_operand.vmem [shape: f32[6,128], index: 1, kind: input, shape index: {}]   ;;  %s1268_s2 = inlined_call_operand.vmem [shape: f32[16,1], index: 2, kind: input, shape index: {}]   ;;  %s1269_s3 = inlined_call_operand.vmem [shape: f32[8,1], index: 3, kind: input, shape index: {}]   ;;  %s1270_s4 = inlined_call_operand.vmem [shape: f32[16,8], index: 4, kind: input, shape index: {}]   ;;  %s1271_s5 = inlined_call_operand.vmem [shape: f32[8,16], index: 5, kind: input, shape index: {}]   ;;  %s1272_s6 = inlined_call_operand.vmem [shape: f32[32,64], index: 6, kind: input, shape index: {}]   ;;  %s1273_s7 = inlined_call_operand.vmem [shape: f32[64,32], index: 7, kind: input, shape index: {}]   ;;  %s1274_s8 = inlined_call_operand.hbm [shape: f32[16,32], index: 8, kind: output, shape index: {}]  }
   0x1   :  { %15 = vsyncpa [#allocation3 + $0x1], 0  ;;  %s1065_s27 = smov 0   ;;  %s1067_s28 = smov 0  }
   0x2   :  { %s1069_s29 = smov 0   ;;  %s1071_s30 = smov 0  }
   0x3 LB: > { %s1086_s9 = sadd.s32 4294967295, %s1013_s30   ;;  %s798_s10 = sadd.s32 4294967294, %s1013_s30   ;;  %s1013_s30 = sphi %s1071_s30, %s1280_s30   ;;  %s1009_s29 = sphi %s1069_s29, %s1279_s29   ;;  %s1005_s28 = sphi %s1067_s28, %s1278_s28   ;;  %s1001_s27 = sphi %s1065_s27, %s1277_s27  }
   0x4   : > { %s1090_s11 = sadd.s32 1, %s1013_s30   ;;  %s201_s12 = sadd.s32 1, %s1009_s29 }
   0x5   : > { %s198_s13 = ssub.s32 %s1013_s30, %s1090_s11  ;;  %p211_p0 = scmp.ne.s32.totalorder %s1009_s29, %s1005_s28 }
   0x6   : > { %p199_p1 = scmp.eq.s32.totalorder %s198_s13, 0  ;;  %p212_p2 = scmp.eq.s32.totalorder %s1086_s9, 1 }
   0x7   : > { %p217_p3 = scmp.ne.s32.totalorder %s1005_s28, %s1001_s27  ;;  %p218_p4 = scmp.eq.s32.totalorder %s798_s10, 1 }
   0x8   : > { %s1101_s14 = scalar_select %p199_p1, %s1009_s29, %s201_s12  }
   0x9   : > { %p1103_p5 = por %p212_p2, %p211_p0  ;;  %p1107_p6 = por %p218_p4, %p217_p3 }
   0xa   : > { %p801_p7 = scmp.ge.s32.totalorder %s1013_s30, 1  ;;  %p264_p8 = scmp.lt.s32.totalorder %s1013_s30, 3 }
   0xc   : > { %p265_p9 = pnand %p801_p7, %p264_p8 }
   0xd   : > { %p297_p10 = scmp.lt.s32.totalorder (!%p265_p9), %s1086_s9, 1  ;;  %vm309_vm0 = vcmask (!%p265_p9), 261120   ;;  %v306_v7 = vld [vmem:[%s1270_s4] sm:$0xff] (!%p265_p9)  ;;  %vm344_vm1 = vcmask (!%p265_p9), 64512   ;;  %v1015_v9 = vmov (!%p265_p9), 0   ;;  %v304_v10 = vld [vmem:[%s1268_s2 + $0x8] sm:$0xff] (!%p265_p9)  ;;  %v324_v13 = vlaneseq (!%p265_p9) }
   0xe   : > { %268 = sbr.rel (%p265_p9) target bundleno = 1584 (0x630), region = 52  ;;  %835 = vmatprep.mubr.msk.f32.mxu0 (!%p265_p9), %vm344_vm1, %v306_v7  ;;  %v303_v8 = vld [vmem:[%s1268_s2] sm:$0xff] (!%p265_p9)  ;;  %939 = vset.pattern.permute.xlu1 (!%p265_p9), %v1015_v9  ;;  %v307_v25 = vld [vmem:[%s1270_s4 + $0x8] sm:$0xff] (!%p265_p9)  ;;  %v1016_v26 = vmov (!%p265_p9), 0.0|0.0   ;;  %vm1017_vm2 = vmmov (!%p265_p9), 0   ;;  %v1018_v27 = vmov (!%p265_p9), 0.0  }
   0xf   : > { %940 = vset.pattern.permute.xlu0 (!%p265_p9), %v1015_v9  ;;  %336 = vperm.xlu1 (!%p265_p9), %939, %v303_v8   ;;  %v1134_v15 = vshrl.u32 (!%p265_p9), %v324_v13, 7  ;;  %v1140_v17 = vld [vmem:[%s1267_s1] sm:$0x3f] (!%p265_p9)  ;;  %vm449_vm3 = vcmask (!%p265_p9), 130048   ;;  %vm649_vm4 = vcmask (!%p265_p9), 523264   ;;  %s810_s23 = sshll.u32 (!%p265_p9), %s1086_s9, 7 }
  0x10   : > { %884 = vmatprep.subr.bf16.mxu1 (!%p265_p9), %v1016_v26  ;;  %872 = vmatprep.mubr.msk.f32.mxu1 (!%p265_p9), %vm1017_vm2, %v1018_v27  ;;  %v305_v28 = vld [vmem:[%s1269_s3] sm:$0xff] (!%p265_p9)  ;;  %s1223_s12 = scalar_lea.hbm (!%p265_p9), %s1274_s8, %s810_s23 }
  0x11   : > { %v326_v16 = vsub.s32 (!%p265_p9), 0, %v1134_v15  ;;  %v331_v18 = vsub.s32 (!%p265_p9), 1, %v1134_v15  ;;  %v308_v54 = vld [vmem:[%s1271_s5] sm:$0xff] (!%p265_p9) }
  0x13   : > { %341 = vperm.xlu1 (!%p265_p9), %939, %v304_v10   ;;  %v327_v19 = vrot.slane (!%p265_p9), %v1140_v17, %v326_v16  ;;  %v332_v22 = vrot.slane (!%p265_p9), %v1140_v17, %v331_v18 }
  0x15   : > { %s298_s17 = scalar_select %p297_p10, %s1086_s9, 1 }
  0x17   : > { %s803_s18 = sshll.u32 %s298_s17, 3  ;;  %s1019_s17 = smov [#allocation2]  }
  0x18   : > { %s300_s21 = scalar_lea.vmem %s1266_s0, %s803_s18  ;;  %s955_s18 = sshll.u32 %s1019_s17, 4  ;;  %s956_s18 = int_to_ptr.vmem [resolvable:$false] %s955_s18 }
  0x19   : > { %v1118_v0 = vld [vmem:[%s300_s21] sm:$0xff]  ;;  %s294_s21 = sand.u32 1, %s1005_s28   ;;  %s957_s19 = scalar_lea.vmem %s956_s18, 256 }
  0x1a   : > { %v310_v1 = vsel %vm309_vm0, %v1118_v0, 0.0  ;;  %s802_s22 = sshll.u32 %s294_s21, 3  ;;  %s726_s13 = scalar_lea.sflag [#allocation3], %s294_s21 }
  0x1b   : > { %311 = vadd.xlane.f32.xlu0 %v310_v1  ;;  %s296_s24 = scalar_lea.vmem [#allocation2], %s802_s22 }
  0x1c   : > { %s739_s25 = sshll.u32 %s296_s24, 4  ;;  %s1225_s25 = int_to_ptr.vmem [resolvable:$true] %s739_s25 }
  0x1d   : > { %s951_s9 = scalar_lea.vmem %s1225_s25, 128  ;;  %p958_p0 = scmp.lt.s32.totalorder %s1225_s25, %s956_s18 }
  0x1e   : > { %p952_p11 = scmp.ne.s32.totalorder %s1225_s25, %s951_s9  ;;  %p959_p1 = scmp.lt.s32.totalorder %s957_s19, %s951_s9 }
  0x20   : > { %p953_p12 = pnand %p952_p11, %p1103_p5  ;;  %p960_p2 = por %p959_p1, %p958_p0 }
  0x22   : > { %p954_p13 = pneg %p953_p12 }
  0x24   : > { %p961_p3 = pnand %p960_p2, %p954_p13 }
  0x8e   : > { %v337_v29 = vpop.permute.xlu1 %336 }
  0x92   : > { %v342_v30 = vpop.permute.xlu1 %341 }
  0xa8   : > { %v312_v2 = vpop.xlane.xlu0 %311 }
  0xa9   : > { %v314_v3 = vmul.f32 0.03125, %v312_v2 }
  0xab   : > { %v315_v4 = vsub.f32 %v1118_v0, %v314_v3  ;;  %v547_v3 = vld [vmem:[%s1272_s6] sm:$0xff] }
  0xad   : > { %v316_v5 = vmul.f32 %v315_v4, %v315_v4 }
  0xaf   : > { %v317_v6 = vsel %vm309_vm0, %v316_v5, 0.0  ;;  %v549_v5 = vld [vmem:[%s1272_s6 + $0x10] sm:$0xff] }
  0xb0   : > { %318 = vadd.xlane.f32.xlu0 %v317_v6  ;;  %v550_v6 = vld [vmem:[%s1272_s6 + $0x18] sm:$0xff] }
  0xb1   : > { %v882_v7 = vpack.c.bf16 %v550_v6, %v549_v5 }
  0xc6   : > { %446 = vperm.xlu0 %940, %v305_v28   ;;  %v641_v28 = vld [vmem:[%s1273_s7 + $0x20] sm:$0xff] }
 0x13d   : > { %v319_v11 = vpop.xlane.xlu0 %318 }
 0x13e   : > { %v320_v12 = vmul.f32 0.03125, %v319_v11  ;;  %v539_v11 = vsub.s32 2, %v1134_v15 }
 0x140   : > { %v321_v14 = vadd.f32 1e-05, %v320_v12  ;;  %v544_v12 = vsub.s32 3, %v1134_v15  ;;  %v540_v13 = vrot.slane %v1140_v17, %v539_v11 }
 0x142   : > { %941 = vrsqrt.f32 %v321_v14  ;;  %v545_v18 = vrot.slane %v1140_v17, %v544_v12 }
 0x145   : > { %v447_v55 = vpop.permute.xlu0 %446 }
 0x14c   : > { %v942_v20 = vpop.eup %941 }
 0x14d   : > { %v323_v21 = vmul.f32 %v942_v20, %v315_v4 }
 0x14f   : > { %v328_v23 = vmul.f32 %v327_v19, %v323_v21  ;;  %v637_v21 = vld [vmem:[%s1273_s7] sm:$0xff] }
 0x151   : > { %v333_v24 = vadd.f32 %v332_v22, %v328_v23  ;;  %v638_v22 = vld [vmem:[%s1273_s7 + $0x8] sm:$0xff]  ;;  %v639_v23 = vld [vmem:[%s1273_s7 + $0x10] sm:$0xff] }
 0x153   : > { %833 = vmatprep.subr.mxu0 %v333_v24 }
 0x154   : > { %834 = vmatpush3.msra.mxu0 %v333_v24  ;;  %v885_v24 = vpack.c.bf16 %v638_v22, %v637_v21 }
 0x155   : > { %836 = vmatmul.mubr.msk.f32.vlgmr.msra.gmra.mrb[0].mxu0 %vm344_vm1, %v307_v25  ;;  %875 = vmatprep.subr.bf16.mxu0 %v1016_v26  ;;  %v640_v25 = vld [vmem:[%s1273_s7 + $0x18] sm:$0xff] }
 0x156   : > { %842 = vmatprep.mubr.msk.f32.mxu0 %vm1017_vm2, %v1018_v27  ;;  %886 = vmatpush3.bf16.msra.mxu1 %v885_v24 }
 0x157   : > { %887 = vmatprep.subr.bf16.mxu1 %v1016_v26 }
 0x228   : > { %v837_v31 = vpop.f32.mrb[0].mxu0 }
 0x229   : > { %v423_v32 = vadd.f32 %v837_v31, %v342_v30  ;;  %v417_v33 = vpop.f32.mrb[1].mxu0  ;;  %v643_v31 = vld [vmem:[%s1273_s7 + $0x30] sm:$0xff] }
 0x22a   : > { %v418_v34 = vadd.f32 %v417_v33, %v337_v29  ;;  %v642_v29 = vld [vmem:[%s1273_s7 + $0x28] sm:$0xff] }
 0x22b   : > { %v429_v35 = vmul.f32 0.044715, %v423_v32  ;;  %v427_v47 = vmul.f32 0.5, %v423_v32  ;;  %v891_v30 = vpack.c.bf16 %v642_v29, %v641_v28 }
 0x22c   : > { %v428_v36 = vmul.f32 0.044715, %v418_v34  ;;  %v426_v49 = vmul.f32 0.5, %v418_v34 }
 0x22d   : > { %v431_v37 = vmul.f32 %v429_v35, %v423_v32 }
 0x22e   : > { %v430_v38 = vmul.f32 %v428_v36, %v418_v34 }
 0x22f   : > { %v433_v39 = vmul.f32 %v431_v37, %v423_v32 }
 0x230   : > { %v432_v40 = vmul.f32 %v430_v38, %v418_v34 }
 0x231   : > { %v435_v41 = vadd.f32 %v433_v39, %v423_v32  ;;  %v644_v32 = vld [vmem:[%s1273_s7 + $0x38] sm:$0xff] }
 0x232   : > { %v434_v42 = vadd.f32 %v432_v40, %v418_v34  ;;  %v894_v33 = vpack.c.bf16 %v644_v32, %v643_v31  ;;  %v553_v34 = vsub.s32 4, %v1134_v15 }
 0x233   : > { %v437_v43 = vmul.f32 0.7978846, %v435_v41 }
 0x234   : > { %v436_v44 = vmul.f32 0.7978846, %v434_v42  ;;  %v554_v35 = vrot.slane %v1140_v17, %v553_v34 }
 0x235   : > { %943 = vtanh.f32 %v437_v43 }
 0x236   : > { %945 = vtanh.f32 %v436_v44 }
 0x23f   : > { %v944_v45 = vpop.eup %943 }
 0x240   : > { %v946_v46 = vpop.eup %945  ;;  %v441_v48 = vadd.f32 1.0, %v944_v45 }
 0x241   : > { %v440_v50 = vadd.f32 1.0, %v946_v46 }
 0x242   : > { %v443_v51 = vmul.f32 %v441_v48, %v427_v47  ;;  %v647_v47 = vsub.s32 5, %v1134_v15 }
 0x243   : > { %v442_v52 = vmul.f32 %v440_v50, %v426_v49 }
 0x244   : > { %v648_v48 = vrot.slane %v1140_v17, %v647_v47 }
 0x245   : > { %v876_v53 = vpack.c.bf16 %v443_v51, %v442_v52 }
 0x247   : > { %877 = vmatpush3.bf16.msra.mxu0 %v876_v53 }
 0x248   : > { %878 = vmatprep.subr.bf16.mxu0 %v1016_v26 }
 0x24a   : > { %843 = vmatmul.mubr.msk.f32.vlgmr.msra.gmra.mrb[2].mxu0 %vm449_vm3, %v308_v54 }
 0x24b   : > { %853 = vmatprep.mubr.msk.f32.mxu0 %vm1017_vm2, %v1018_v27  ;;  %v888_v27 = vpack.c.bf16 %v640_v25, %v639_v23 }
 0x24d   : > { %889 = vmatpush3.bf16.msra.mxu1 %v888_v27 }
 0x24e   : > { %890 = vmatprep.subr.bf16.mxu1 %v1016_v26 }
 0x251   : > { %892 = vmatpush3.bf16.msra.mxu1 %v891_v30 }
 0x252   : > { %893 = vmatprep.subr.bf16.mxu1 %v1016_v26 }
 0x255   : > { %895 = vmatpush3.bf16.msra.mxu1 %v894_v33 }
 0x31d   : > { %v519_v56 = vpop.f32.mrb[2].mxu0 }
 0x31e   : > { %v520_v57 = vadd.f32 %v519_v56, %v447_v55  ;;  %v844_v58 = vpop.f32.mrb[3].mxu0 }
 0x320   : > { %v1162_v59 = vadd.f32 %v520_v57, %v1118_v0  ;;  %v548_v0 = vld [vmem:[%s1272_s6 + $0x8] sm:$0xff] }
 0x321   : > { %v879_v4 = vpack.c.bf16 %v548_v0, %v547_v3 }
 0x322   : > { %v524_v60 = vsel %vm309_vm0, %v1162_v59, 0.0 }
 0x323   : > { %525 = vadd.xlane.f32.xlu1 %v524_v60  ;;  %880 = vmatpush3.bf16.msra.mxu0 %v879_v4 }
 0x324   : > { %881 = vmatprep.subr.bf16.mxu0 %v1016_v26 }
 0x327   : > { %883 = vmatpush3.bf16.msra.mxu0 %v882_v7 }
 0x3b0   : > { %v526_v61 = vpop.xlane.xlu1 %525 }
 0x3b1   : > { %v527_v62 = vmul.f32 0.03125, %v526_v61 }
 0x3b3   : > { %v528_v63 = vsub.f32 %v1162_v59, %v527_v62 }
 0x3b5   : > { %v529_v1 = vmul.f32 %v528_v63, %v528_v63 }
 0x3b7   : > { %v530_v2 = vsel %vm309_vm0, %v529_v1, 0.0 }
 0x3b8   : > { %531 = vadd.xlane.f32.xlu1 %v530_v2 }
 0x445   : > { %v532_v8 = vpop.xlane.xlu1 %531 }
 0x446   : > { %v533_v9 = vmul.f32 0.03125, %v532_v8 }
 0x448   : > { %v534_v10 = vadd.f32 1e-05, %v533_v9 }
 0x44a   : > { %947 = vrsqrt.f32 %v534_v10 }
 0x454   : > { %v948_v14 = vpop.eup %947 }
 0x455   : > { %v536_v16 = vmul.f32 %v948_v14, %v528_v63 }
 0x457   : > { %v541_v19 = vmul.f32 %v540_v13, %v536_v16 }
 0x459   : > { %v546_v20 = vadd.f32 %v545_v18, %v541_v19 }
 0x45b   : > { %854 = vmatmul.mubr.msk.f32.vlgmr.msra.gmra.mrb[4].mxu0 %vm309_vm0, %v546_v20 }
 0x52e   : > { %v624_v36 = vpop.f32.mrb[4].mxu0 }
 0x52f   : > { %v625_v37 = vadd.f32 %v624_v36, %v554_v35  ;;  %v855_v38 = vpop.f32.mrb[5].mxu0 }
 0x531   : > { %v629_v39 = vmul.f32 0.044715, %v625_v37  ;;  %v628_v45 = vmul.f32 0.5, %v625_v37 }
 0x533   : > { %v630_v40 = vmul.f32 %v629_v39, %v625_v37 }
 0x535   : > { %v631_v41 = vmul.f32 %v630_v40, %v625_v37 }
 0x537   : > { %v632_v42 = vadd.f32 %v631_v41, %v625_v37 }
 0x539   : > { %v633_v43 = vmul.f32 0.7978846, %v632_v42 }
 0x53b   : > { %949 = vtanh.f32 %v633_v43 }
 0x545   : > { %v950_v44 = vpop.eup %949 }
 0x546   : > { %v635_v46 = vadd.f32 1.0, %v950_v44 }
 0x548   : > { %v636_v26 = vmul.f32 %v635_v46, %v628_v45 }
 0x54a   : > { %873 = vmatmul.mubr.msk.f32.vlgmr.msra.gmra.mrb[0].mxu1 %vm649_vm4, %v636_v26 }
 0x61d   : > { %v719_v49 = vpop.f32.mrb[0].mxu1 }
 0x61e   : > { %v720_v50 = vadd.f32 %v719_v49, %v648_v48  ;;  %v874_v51 = vpop.f32.mrb[1].mxu1 }
 0x620   : > { %v723_v52 = vadd.f32 %v720_v50, %v1162_v59 }
 0x622   : > { %724 = vst.msk [vmem:[%s296_s24] sm:$0xff] %vm309_vm0, %v723_v52 }
 0x623   : > { %964 = shalt.err (!%p961_p3)
}
 0x624   : > { %s965_s20 = scalar_lea.hbm %s1223_s12, 128  ;;  %s969_s23 = scalar_lea.hbm %s1274_s8, 256 }
 0x625   : > { %p966_p4 = scmp.ne.s32.totalorder %s1223_s12, %s965_s20  ;;  %p970_p9 = scmp.lt.u32.totalorder %s1223_s12, %s1274_s8 }
 0x626   : > { %p971_p10 = scmp.lt.u32.totalorder %s969_s23, %s965_s20  ;;  %p973_p12 = scmp.lt.u32.totalorder %s965_s20, %s1223_s12 }
 0x627   : > { %p967_p7 = pnand %p966_p4, %p1103_p5 }
 0x628   : > { %p972_p11 = por %p971_p10, %p970_p9 }
 0x629   : > { %p968_p8 = pneg %p967_p7 }
 0x62a   : > { %p974_p13 = por %p973_p12, %p972_p11 }
 0x62c   : > { %p975_p0 = pnand %p974_p13, %p968_p8 }
 0x62e   : > { %978 = shalt.err (!%p975_p0)
}
 0x62f   : > { %896 = dma.vmem_to_hbm [thread:$0]  (%p1103_p5), %s1225_s25, 128, %s1223_s12, %s726_s13  }
 0x630 PF: > { %p902_p1 = scmp.ge.s32.totalorder %s1013_s30, 2  ;;  %s751_s10 = sand.u32 1, %s1001_s27  }
 0x631   : > { %s752_s9 = scalar_lea.sflag [#allocation3], %s751_s10 }
 0x632   : > { %p899_p2 = pnand %p902_p1, %p1107_p6 }
 0x634   : > { %996 = dma.done.wait (!%p899_p2), %s752_s9, 128  }
 0x635   : > { %998 = vsyncadd (!%p899_p2), %s752_s9, 4294967168  ;;  %p18_p3 = scmp.ge.s32.totalorder %s1090_s11, 4   ;;  %s1277_s27 = smov %s1005_s28 }
 0x636   : > { %s1278_s28 = smov %s1009_s29  ;;  %s1279_s29 = smov %s1101_s14 }
 0x637   : > { %s1280_s30 = smov %s1090_s11  ;;  %20 = sbr.rel (!%p18_p3) target bundleno = 3 (0x3), region = 87 }
 0x63e   :  { %757 = vsyncpa [#allocation3], 1 }
 0x63f   :  { %759 = vsyncpa [#allocation3 + $0x1], 1 }

</bundles_post_ra>
